<compile_context>
chip_gen: v7x
topology: tpu7x:2x2x1
jax: 0.10.0
libtpu: 0.0.40
codegen_flags: <defaults>
</compile_context>

<pallas_src>
import functools

import jax
import jax.numpy as jnp
from jax.experimental import pallas as pl
from jax.experimental.pallas import tpu as pltpu

BN_EPS = 1e-5


# ----------------------------- kernels ------------------------------------ #

def _kernel_identity(x_ref, w1t_ref, t1_ref, w2t_ref, t2_ref, out_ref):
    """Fin == Fout, identity shortcut."""
    x = x_ref[...]                                                     # bf16 (tn, F)
    h = jnp.dot(x, w1t_ref[...], preferred_element_type=jnp.float32)  # (tn, F) f32
    h = jnp.maximum(h + t1_ref[...], 0.0)
    o = jnp.dot(h.astype(jnp.bfloat16), w2t_ref[...],
                preferred_element_type=jnp.float32)
    o = o + t2_ref[...] + x.astype(jnp.float32)
    out_ref[...] = jnp.maximum(o, 0.0).astype(out_ref.dtype)


def _kernel_proj_fused(x_ref, w1st_ref, t1_ref, ts_ref, w2t_ref, t2_ref,
                       out_ref, *, fout):
    """Projection shortcut, Fout % 128 == 0: one fused (Fin, 2*Fout) dot."""
    x = x_ref[...]                                                     # bf16 (tn, Fin)
    y = jnp.dot(x, w1st_ref[...], preferred_element_type=jnp.float32)  # (tn, 2F)
    h = jnp.maximum(y[:, :fout] + t1_ref[...], 0.0)
    idn = y[:, fout:] + ts_ref[...]
    o = jnp.dot(h.astype(jnp.bfloat16), w2t_ref[...],
                preferred_element_type=jnp.float32)
    o = o + t2_ref[...] + idn
    out_ref[...] = jnp.maximum(o, 0.0).astype(out_ref.dtype)


def _kernel_proj_split(x_ref, w1t_ref, t1_ref, wst_ref, ts_ref, w2t_ref,
                       t2_ref, out_ref):
    """Projection shortcut, Fout not a multiple of 128: two separate dots."""
    x = x_ref[...]
    h = jnp.dot(x, w1t_ref[...], preferred_element_type=jnp.float32)
    h = jnp.maximum(h + t1_ref[...], 0.0)
    idn = jnp.dot(x, wst_ref[...], preferred_element_type=jnp.float32) + ts_ref[...]
    o = jnp.dot(h.astype(jnp.bfloat16), w2t_ref[...],
                preferred_element_type=jnp.float32)
    o = o + t2_ref[...] + idn
    out_ref[...] = jnp.maximum(o, 0.0).astype(out_ref.dtype)


# ----------------------------- wrapper ------------------------------------ #

def _fold_bn(w, b, gamma, beta, mean, var):
    """Fold Linear bias + eval-mode BN into a bf16 scaled W^T and an f32 shift.

    bn(Wx + b) = (W*scale) x + ((b - mean)*scale + beta)
    """
    scale = gamma / jnp.sqrt(var + BN_EPS)                     # (Fout,)
    shift = (b - mean) * scale + beta                          # (Fout,)
    wt_scaled = (jnp.transpose(w) * scale[None, :]).astype(jnp.bfloat16)
    return wt_scaled, shift.reshape(1, -1).astype(jnp.float32)


def residual_mlp_block(x, params, *, block_n=512):
    """x: (N, Fin) float32.

    params keys: w1 (Fout,Fin) b1 g1 be1 m1 v1  |  w2 (Fout,Fout) b2 g2 be2 m2 v2
    and, only when Fin != Fout, the projection shortcut: ws (Fout,Fin) bs gs bes ms vs.
    """
    N, Fin = x.shape
    w1t, t1 = _fold_bn(params["w1"], params["b1"], params["g1"],
                       params["be1"], params["m1"], params["v1"])
    Fout = w1t.shape[1]
    w2t, t2 = _fold_bn(params["w2"], params["b2"], params["g2"],
                       params["be2"], params["m2"], params["v2"])

    has_proj = "ws" in params
    if has_proj:
        wst, ts = _fold_bn(params["ws"], params["bs"], params["gs"],
                           params["bes"], params["ms"], params["vs"])
    else:
        assert Fin == Fout, "identity shortcut requires in_features == out_features"

    # Batch tile: multiple of 8 sublanes, big enough to amortize per-step
    # overhead, but never fewer than 2 grid steps (v7x megacore sharding).
    half = -(-N // 2)                                   # ceil(N / 2)
    tn = min(block_n, max(8, ((half + 7) // 8) * 8))
    n_steps = pl.cdiv(N, tn)
    n_pad = n_steps * tn

    xp = x.astype(jnp.bfloat16)                         # halve activation DMA bytes
    if n_pad != N:
        xp = jnp.pad(xp, ((0, n_pad - N), (0, 0)))

    rep = lambda i: (0, 0)                              # weights resident across steps
    x_spec = pl.BlockSpec((tn, Fin), lambda i: (i, 0))
    vec_spec = pl.BlockSpec((1, Fout), rep)
    w2_spec = pl.BlockSpec((Fout, Fout), rep)

    fused = has_proj and (Fout % 128 == 0)
    if not has_proj:
        kernel = _kernel_identity
        operands = (xp, w1t, t1, w2t, t2)
        in_specs = [x_spec, pl.BlockSpec((Fin, Fout), rep), vec_spec,
                    w2_spec, vec_spec]
        w_elems = Fin * Fout + Fout * Fout
        n_vec = 2
    elif fused:
        w1st = jnp.concatenate([w1t, wst], axis=1)      # (Fin, 2*Fout), bf16
        kernel = functools.partial(_kernel_proj_fused, fout=Fout)
        operands = (xp, w1st, t1, ts, w2t, t2)
        in_specs = [x_spec, pl.BlockSpec((Fin, 2 * Fout), rep), vec_spec,
                    vec_spec, w2_spec, vec_spec]
        w_elems = 2 * Fin * Fout + Fout * Fout
        n_vec = 3
    else:
        kernel = _kernel_proj_split
        operands = (xp, w1t, t1, wst, ts, w2t, t2)
        in_specs = [x_spec, pl.BlockSpec((Fin, Fout), rep), vec_spec,
                    pl.BlockSpec((Fin, Fout), rep), vec_spec, w2_spec, vec_spec]
        w_elems = 2 * Fin * Fout + Fout * Fout
        n_vec = 3

    # Cost estimate (advisory, helps XLA schedule the fold/pad/slice around us).
    flops = 2 * n_pad * Fin * Fout * (2 if has_proj else 1) + 2 * n_pad * Fout * Fout
    bytes_accessed = (w_elems * 2 + n_vec * Fout * 4
                      + n_pad * Fin * 2 + n_pad * Fout * 4)
    cost = pl.CostEstimate(flops=flops, transcendentals=0,
                           bytes_accessed=bytes_accessed)

    # Explicit VMEM budget: double-buffered inputs/outputs + intermediate slack.
    buf_bytes = 2 * (w_elems * 2 + n_vec * Fout * 4 + tn * Fin * 2 + tn * Fout * 4)
    scratch_bytes = 8 * tn * Fout * 4                   # f32 intermediates margin
    vmem_limit = int(min(max(buf_bytes + scratch_bytes + (4 << 20), 32 << 20),
                         64 << 20))

    out = pl.pallas_call(
        kernel,
        out_shape=jax.ShapeDtypeStruct((n_pad, Fout), x.dtype),
        grid=(n_steps,),
        in_specs=in_specs,
        out_specs=pl.BlockSpec((tn, Fout), lambda i: (i, 0)),
        compiler_params=pltpu.CompilerParams(
            dimension_semantics=("parallel",),
            vmem_limit_bytes=vmem_limit),
        cost_estimate=cost,
    )(*operands)
    return out if n_pad == N else out[:N]


# ----------------------------- reference ---------------------------------- #

def residual_mlp_block_ref(x, params):
    """Pure-JAX reference matching the PyTorch forward (BN in eval mode)."""
    def bn(z, g, be, m, v):
        return (z - m) / jnp.sqrt(v + BN_EPS) * g + be

    h = jax.nn.relu(bn(x @ params["w1"].T + params["b1"],
                       params["g1"], params["be1"], params["m1"], params["v1"]))
    o = bn(h @ params["w2"].T + params["b2"],
           params["g2"], params["be2"], params["m2"], params["v2"])
    if "ws" in params:
        idn = bn(x @ params["ws"].T + params["bs"],
                 params["gs"], params["bes"], params["ms"], params["vs"])
    else:
        idn = x
    return jax.nn.relu(o + idn)


def _make_params(key, fin, fout, with_shortcut):
    ks = iter(jax.random.split(key, 24))
    def w(shape, scale=0.1):
        return jax.random.normal(next(ks), shape, jnp.float32) * scale
    p = {
        "w1": w((fout, fin)), "b1": w((fout,)),
        "g1": 1.0 + w((fout,)), "be1": w((fout,)),
        "m1": w((fout,)), "v1": 0.7 + jnp.abs(w((fout,), 0.3)),
        "w2": w((fout, fout)), "b2": w((fout,)),
        "g2": 1.0 + w((fout,)), "be2": w((fout,)),
        "m2": w((fout,)), "v2": 0.7 + jnp.abs(w((fout,), 0.3)),
    }
    if with_shortcut:
        p.update({
            "ws": w((fout, fin)), "bs": w((fout,)),
            "gs": 1.0 + w((fout,)), "bes": w((fout,)),
            "ms": w((fout,)), "vs": 0.7 + jnp.abs(w((fout,), 0.3)),
        })
    return p


if __name__ == "__main__":
    key = jax.random.PRNGKey(0)
    k_x1, k_p1, k_x2, k_p2 = jax.random.split(key, 4)

    # Case 1: in_features != out_features -> projection shortcut (fused dot).
    N, Fin, Fout = 16, 64, 128
    x1 = jax.random.normal(k_x1, (N, Fin), jnp.float32)
    p1 = _make_params(k_p1, Fin, Fout, with_shortcut=True)
    out1 = jax.block_until_ready(residual_mlp_block(x1, p1))
    ref1 = residual_mlp_block_ref(x1, p1)
    assert out1.shape == ref1.shape and out1.dtype == ref1.dtype
    err1 = float(jnp.max(jnp.abs(out1 - ref1)))
    assert jnp.allclose(out1, ref1, atol=2.5e-2, rtol=2.5e-2), err1

    # Case 2: in_features == out_features -> identity shortcut.
    x2 = jax.random.normal(k_x2, (N, Fout), jnp.float32)
    p2 = _make_params(k_p2, Fout, Fout, with_shortcut=False)
    out2 = jax.block_until_ready(residual_mlp_block(x2, p2))
    ref2 = residual_mlp_block_ref(x2, p2)
    assert out2.shape == ref2.shape and out2.dtype == ref2.dtype
    err2 = float(jnp.max(jnp.abs(out2 - ref2)))
    assert jnp.allclose(out2, ref2, atol=2.5e-2, rtol=2.5e-2), err2

    print("KERNEL_OK")
</pallas_src>

<mosaic_0001>
module attributes {stable_mosaic.version = 11 : i64} {
  func.func @_kernel_proj_fused(%arg0: i32, %arg1: memref<8x64xbf16, #tpu.memory_space<vmem>>, %arg2: memref<64x256xbf16, #tpu.memory_space<vmem>>, %arg3: memref<1x128xf32, #tpu.memory_space<vmem>>, %arg4: memref<1x128xf32, #tpu.memory_space<vmem>>, %arg5: memref<128x128xbf16, #tpu.memory_space<vmem>>, %arg6: memref<1x128xf32, #tpu.memory_space<vmem>>, %arg7: memref<8x128xf32, #tpu.memory_space<vmem>>) attributes {dimension_semantics = [#tpu.dimension_semantics<parallel>], iteration_bounds = array<i64: 2>, scalar_prefetch = 0 : i64, scratch_operands = 0 : i64, tpu.core_type = #tpu.core_type<tc>, window_params = [{transform_indices = @transform_0, window_bounds = array<i64: 8, 64>}, {pipeline_mode = #tpu.pipeline_mode<synchronous>, transform_indices = @transform_1, window_bounds = array<i64: 64, 256>}, {pipeline_mode = #tpu.pipeline_mode<synchronous>, transform_indices = @transform_2, window_bounds = array<i64: 1, 128>}, {pipeline_mode = #tpu.pipeline_mode<synchronous>, transform_indices = @transform_3, window_bounds = array<i64: 1, 128>}, {pipeline_mode = #tpu.pipeline_mode<synchronous>, transform_indices = @transform_4, window_bounds = array<i64: 128, 128>}, {pipeline_mode = #tpu.pipeline_mode<synchronous>, transform_indices = @transform_5, window_bounds = array<i64: 1, 128>}, {transform_indices = @transform_6, window_bounds = array<i64: 8, 128>}]} {
    %c0 = arith.constant 0 : index
    %c0_0 = arith.constant 0 : index
    %0 = vector.load %arg1[%c0, %c0_0] : memref<8x64xbf16, #tpu.memory_space<vmem>>, vector<8x64xbf16>
    %c0_1 = arith.constant 0 : index
    %c0_2 = arith.constant 0 : index
    %1 = vector.load %arg2[%c0_1, %c0_2] : memref<64x256xbf16, #tpu.memory_space<vmem>>, vector<64x256xbf16>
    %cst = arith.constant dense<0.000000e+00> : vector<8x256xf32>
    %2 = tpu.matmul %0, %1, %cst {dimension_numbers = #tpu.dot_dimension_numbers<[1], [0], [0], [1], [0, 0, 1, 1], [], []>} : vector<8x64xbf16>, vector<64x256xbf16>, vector<8x256xf32> -> vector<8x256xf32>
    %3 = vector.extract_strided_slice %2 {offsets = [0, 0], sizes = [8, 128], strides = [1, 1]} : vector<8x256xf32> to vector<8x128xf32>
    %c0_3 = arith.constant 0 : index
    %c0_4 = arith.constant 0 : index
    %4 = vector.load %arg3[%c0_3, %c0_4] : memref<1x128xf32, #tpu.memory_space<vmem>>, vector<1x128xf32>
    %5 = vector.broadcast %4 : vector<1x128xf32> to vector<8x128xf32>
    %6 = arith.addf %3, %5 : vector<8x128xf32>
    %cst_5 = arith.constant 0.000000e+00 : f32
    %7 = vector.broadcast %cst_5 : f32 to vector<8x128xf32>
    %8 = arith.maximumf %6, %7 : vector<8x128xf32>
    %9 = vector.extract_strided_slice %2 {offsets = [0, 128], sizes = [8, 128], strides = [1, 1]} : vector<8x256xf32> to vector<8x128xf32>
    %c0_6 = arith.constant 0 : index
    %c0_7 = arith.constant 0 : index
    %10 = vector.load %arg4[%c0_6, %c0_7] : memref<1x128xf32, #tpu.memory_space<vmem>>, vector<1x128xf32>
    %11 = vector.broadcast %10 : vector<1x128xf32> to vector<8x128xf32>
    %12 = arith.addf %9, %11 : vector<8x128xf32>
    %13 = arith.truncf %8 : vector<8x128xf32> to vector<8x128xbf16>
    %c0_8 = arith.constant 0 : index
    %c0_9 = arith.constant 0 : index
    %14 = vector.load %arg5[%c0_8, %c0_9] : memref<128x128xbf16, #tpu.memory_space<vmem>>, vector<128x128xbf16>
    %cst_10 = arith.constant dense<0.000000e+00> : vector<8x128xf32>
    %15 = tpu.matmul %13, %14, %cst_10 {dimension_numbers = #tpu.dot_dimension_numbers<[1], [0], [0], [1], [0, 0, 1, 1], [], []>} : vector<8x128xbf16>, vector<128x128xbf16>, vector<8x128xf32> -> vector<8x128xf32>
    %c0_11 = arith.constant 0 : index
    %c0_12 = arith.constant 0 : index
    %16 = vector.load %arg6[%c0_11, %c0_12] : memref<1x128xf32, #tpu.memory_space<vmem>>, vector<1x128xf32>
    %17 = vector.broadcast %16 : vector<1x128xf32> to vector<8x128xf32>
    %18 = arith.addf %15, %17 : vector<8x128xf32>
    %19 = arith.addf %18, %12 : vector<8x128xf32>
    %cst_13 = arith.constant 0.000000e+00 : f32
    %20 = vector.broadcast %cst_13 : f32 to vector<8x128xf32>
    %21 = arith.maximumf %19, %20 : vector<8x128xf32>
    %c0_14 = arith.constant 0 : index
    %c0_15 = arith.constant 0 : index
    %22 = vector.load %arg7[%c0_14, %c0_15] : memref<8x128xf32, #tpu.memory_space<vmem>>, vector<8x128xf32>
    tpu.vector_store %arg7[%c0_14, %c0_15], %21 {strides = array<i32>} : memref<8x128xf32, #tpu.memory_space<vmem>>, vector<8x128xf32>,
    return
  }
  func.func @transform_0(%arg0: i32) -> (i32, i32) {
    %c0_i32 = arith.constant 0 : i32
    %c0_i32_0 = arith.constant 0 : i32
    return %arg0, %c0_i32 : i32, i32
  }
  func.func @transform_1(%arg0: i32) -> (i32, i32) {
    %c0_i32 = arith.constant 0 : i32
    %c0_i32_0 = arith.constant 0 : i32
    %c0_i32_1 = arith.constant 0 : i32
    return %c0_i32, %c0_i32_0 : i32, i32
  }
  func.func @transform_2(%arg0: i32) -> (i32, i32) {
    %c0_i32 = arith.constant 0 : i32
    %c0_i32_0 = arith.constant 0 : i32
    %c0_i32_1 = arith.constant 0 : i32
    return %c0_i32, %c0_i32_0 : i32, i32
  }
  func.func @transform_3(%arg0: i32) -> (i32, i32) {
    %c0_i32 = arith.constant 0 : i32
    %c0_i32_0 = arith.constant 0 : i32
    %c0_i32_1 = arith.constant 0 : i32
    return %c0_i32, %c0_i32_0 : i32, i32
  }
  func.func @transform_4(%arg0: i32) -> (i32, i32) {
    %c0_i32 = arith.constant 0 : i32
    %c0_i32_0 = arith.constant 0 : i32
    %c0_i32_1 = arith.constant 0 : i32
    return %c0_i32, %c0_i32_0 : i32, i32
  }
  func.func @transform_5(%arg0: i32) -> (i32, i32) {
    %c0_i32 = arith.constant 0 : i32
    %c0_i32_0 = arith.constant 0 : i32
    %c0_i32_1 = arith.constant 0 : i32
    return %c0_i32, %c0_i32_0 : i32, i32
  }
  func.func @transform_6(%arg0: i32) -> (i32, i32) {
    %c0_i32 = arith.constant 0 : i32
    %c0_i32_0 = arith.constant 0 : i32
    return %arg0, %c0_i32 : i32, i32
  }
}

</mosaic_0001>

<bundles_post_ra>
// kernel: tpu_custom_call.1
= control target key start
LH: loop header
LB: loop body
LE: loop exit
PB: predicated region body
PF: predicated region fallthrough
CT: control target
= control target key end

     0   :  { %11 = vsyncpa [#allocation3], 0  ;;  %s1231_s0 = inlined_call_operand.hbm [shape: bf16[16,64], index: 0, kind: input, shape index: {}]   ;;  %s1232_s1 = inlined_call_operand.hbm [shape: bf16[64,256], index: 1, kind: input, shape index: {}]   ;;  %s1233_s2 = inlined_call_operand.vmem [shape: f32[1,128], index: 2, kind: input, shape index: {}]   ;;  %s1234_s3 = inlined_call_operand.vmem [shape: f32[1,128], index: 3, kind: input, shape index: {}]   ;;  %s1235_s4 = inlined_call_operand.hbm [shape: bf16[128,128], index: 4, kind: input, shape index: {}]   ;;  %s1236_s5 = inlined_call_operand.vmem [shape: f32[1,128], index: 5, kind: input, shape index: {}]   ;;  %s1237_s6 = inlined_call_operand.hbm [shape: f32[16,128], index: 6, kind: output, shape index: {}]  }
   0x1   :  { %13 = vsyncpa [#allocation3 + $0x1], 0 }
   0x2   :  { %14 = vsyncpa [#allocation6], 0 }
   0x3   :  { %15 = vsyncpa [#allocation4], 0 }
   0x4   :  { %17 = vsyncpa [#allocation4 + $0x1], 0  ;;  %s989_s21 = smov 0   ;;  %s991_s22 = smov 0  }
   0x5   :  { %s993_s23 = smov 0   ;;  %s995_s24 = smov 0  }
   0x6 LB: > { %s1010_s25 = sadd.s32 4294967295, %s941_s24   ;;  %s626_s26 = sadd.s32 4294967294, %s941_s24   ;;  %s941_s24 = sphi %s995_s24, %s1257_s24   ;;  %s937_s23 = sphi %s993_s23, %s1256_s23   ;;  %s933_s22 = sphi %s991_s22, %s1255_s22   ;;  %s929_s21 = sphi %s989_s21, %s1254_s21  }
   0x7   : > { %p43_p0 = scmp.ne.s32.totalorder %s933_s22, %s929_s21  ;;  %p1238_p1 = scmp.eq.s32.totalorder %s1010_s25, 0 }
   0x8   : > { %p178_p3 = scmp.eq.s32.totalorder %s626_s26, 1  ;;  %p627_p5 = scmp.ge.s32.totalorder %s941_s24, 1 }
   0x9   : > { %p1019_p4 = por %p1238_p1, %p43_p0  ;;  %p185_p7 = scmp.lt.s32.totalorder %s941_s24, 3 }
   0xa   : > { %p1024_p6 = por %p178_p3, %p43_p0  ;;  %s943_s30 = smov [#allocation5]  }
   0xb   : > { %s1241_s27 = scalar_select %p1019_p4, 1, 0 }
   0xc   : > { %s1242_s28 = scalar_select %p1024_p6, 1, 0 }
   0xd   : > { %p1029_p8 = pnand %p627_p5, %p185_p7  ;;  %s197_s7 = sshll.u32 %s943_s30, 4  ;;  %s1033_s7 = int_to_ptr.vmem [resolvable:$true] %s197_s7 }
   0xe   : > { %s944_s9 = smov [#allocation7]   ;;  %s785_s13 = scalar_lea.hbm %s1232_s1, 1024 }
   0xf   : > { %p703_p9 = pneg %p1029_p8  ;;  %s216_s10 = sshll.u32 %s944_s9, 4  ;;  %s1044_s10 = int_to_ptr.vmem [resolvable:$true] %s216_s10 }
  0x10   : > { %p786_p12 = scmp.ne.s32.totalorder %s1232_s1, %s785_s13  ;;  %p792_p5 = scmp.lt.u32.totalorder %s785_s13, %s1232_s1 }
  0x11   : > { %p1040_p11 = pnand %p703_p9, %p1238_p1 }
  0x13   : > { %p787_p13 = pneg %p1040_p11 }
  0x15   : > { %p788_p0 = pnand %p787_p13, %p786_p12 }
  0x17   : > { %p789_p3 = pneg %p788_p0 }
  0x19   : > { %p794_p7 = pnand %p792_p5, %p789_p3 }
  0x1b   : > { %797 = shalt.err (!%p794_p7)
}
  0x1c   : > { %s798_s18 = scalar_lea.vmem %s1033_s7, 1024  ;;  %p806_p2 = scmp.lt.s32.totalorder %s1033_s7, %s1033_s7 }
  0x1d   : > { %p799_p9 = scmp.ne.s32.totalorder %s1033_s7, %s798_s18  ;;  %p807_p12 = scmp.lt.s32.totalorder %s798_s18, %s798_s18 }
  0x1f   : > { %p801_p10 = pnand %p799_p9, %p787_p13  ;;  %p808_p0 = por %p807_p12, %p806_p2 }
  0x21   : > { %p802_p1 = pneg %p801_p10 }
  0x23   : > { %p809_p6 = pnand %p808_p0, %p802_p1 }
  0x25   : > { %812 = shalt.err (!%p809_p6)
}
  0x26   : > { %s945_s19 = smov 128   ;;  %s946_s20 = smov 8  }
  0x27   : > { %706 = dma.hbm_to_vmem [thread:$0]  (!%p1040_p11), %s1232_s1, 1024, %s1033_s7, [#allocation6], %s945_s19, %s945_s19, %s946_s20  }
  0x28   : > { %s813_s12 = scalar_lea.hbm %s1235_s4, 1024 }
  0x29   : > { %p814_p2 = scmp.ne.s32.totalorder %s1235_s4, %s813_s12  ;;  %p820_p10 = scmp.lt.u32.totalorder %s813_s12, %s1235_s4 }
  0x2b   : > { %p816_p1 = pnand %p814_p2, %p787_p13 }
  0x2d   : > { %p817_p6 = pneg %p816_p1 }
  0x2f   : > { %p822_p3 = pnand %p820_p10, %p817_p6 }
  0x31   : > { %825 = shalt.err (!%p822_p3)
}
  0x32   : > { %s826_s7 = scalar_lea.vmem %s1044_s10, 1024  ;;  %p834_p12 = scmp.lt.s32.totalorder %s1044_s10, %s1044_s10 }
  0x33   : > { %p827_p5 = scmp.ne.s32.totalorder %s1044_s10, %s826_s7  ;;  %p835_p0 = scmp.lt.s32.totalorder %s826_s7, %s826_s7 }
  0x35   : > { %p829_p7 = pnand %p827_p5, %p787_p13  ;;  %p836_p2 = por %p835_p0, %p834_p12 }
  0x37   : > { %p830_p9 = pneg %p829_p7 }
  0x39   : > { %p837_p1 = pnand %p836_p2, %p830_p9 }
  0x3b   : > { %840 = shalt.err (!%p837_p1)
}
  0x3c   : > { %s947_s17 = smov 64   ;;  %s948_s18 = smov 4  }
  0x3d   : > { %709 = dma.hbm_to_vmem [thread:$0]  (!%p1040_p11), %s1235_s4, 1024, %s1044_s10, [#allocation6], %s947_s17, %s947_s17, %s948_s18  }
  0x3e   : > { %s1099_s26 = sadd.s32 1, %s941_s24   ;;  %s30_s9 = sadd.s32 1, %s937_s23 }
  0x3f   : > { %s27_s30 = ssub.s32 %s941_s24, %s1099_s26  ;;  %p37_p6 = scmp.ne.s32.totalorder %s937_s23, %s933_s22 }
  0x40   : > { %p28_p13 = scmp.eq.s32.totalorder %s27_s30, 0  ;;  %p38_p10 = scmp.eq.s32.totalorder %s941_s24, 0 }
  0x41   : > { %p1245_p5 = scmp.eq.s32.totalorder %s1010_s25, 1  ;;  %p720_p9 = scmp.lt.s32.totalorder %s941_s24, 2 }
  0x42   : > { %s1108_s11 = scalar_select %p28_p13, %s937_s23, %s30_s9  }
  0x43   : > { %p39_p3 = por %p38_p10, %p37_p6  ;;  %p1112_p7 = por %p1245_p5, %p37_p6 }
  0x44   : > { %s233_s8 = sand.u32 1, %s937_s23   ;;  %s632_s10 = sshll.u32 %s941_s24, 6 }
  0x45   : > { %s1246_s12 = scalar_select %p1112_p7, 1, 0 }
  0x46   : > { %s631_s13 = sshll.u32 %s233_s8, 2  ;;  %s1122_s16 = scalar_lea.hbm %s1231_s0, %s632_s10 }
  0x47   : > { %s237_s7 = scalar_lea.vmem [#allocation2], %s631_s13  ;;  %p1126_p11 = pnand %p720_p9, %p39_p3 }
  0x48   : > { %s244_s17 = sshll.u32 %s237_s7, 4  ;;  %s234_s19 = scalar_lea.sflag [#allocation3], %s233_s8  ;;  %s1124_s17 = int_to_ptr.vmem [resolvable:$true] %s244_s17 }
  0x49   : > { %s841_s20 = scalar_lea.hbm %s1122_s16, 64  ;;  %p843_p0 = pneg %p1126_p11 }
  0x4a   : > { %p842_p12 = scmp.ne.s32.totalorder %s1122_s16, %s841_s20  ;;  %s846_s13 = scalar_lea.hbm %s1231_s0, 128 }
  0x4b   : > { %p847_p13 = scmp.lt.u32.totalorder %s1122_s16, %s1231_s0  ;;  %p848_p6 = scmp.lt.u32.totalorder %s846_s13, %s841_s20 }
  0x4c   : > { %p844_p2 = pnand %p843_p0, %p842_p12  ;;  %p850_p3 = scmp.lt.u32.totalorder %s841_s20, %s1122_s16 }
  0x4d   : > { %p849_p10 = por %p848_p6, %p847_p13 }
  0x4e   : > { %p845_p1 = pneg %p844_p2 }
  0x4f   : > { %p851_p5 = por %p850_p3, %p849_p10 }
  0x51   : > { %p852_p9 = pnand %p851_p5, %p845_p1 }
  0x53   : > { %855 = shalt.err (!%p852_p9)
}
  0x54   : > { %s856_s8 = scalar_lea.vmem %s1124_s17, 64  ;;  %s949_s15 = smov [#allocation2]  }
  0x55   : > { %p857_p12 = scmp.ne.s32.totalorder %s1124_s17, %s856_s8  ;;  %s861_s7 = sshll.u32 %s949_s15, 4  ;;  %s862_s7 = int_to_ptr.vmem [resolvable:$false] %s861_s7 }
  0x56   : > { %s863_s30 = scalar_lea.vmem %s862_s7, 128  ;;  %p864_p4 = scmp.lt.s32.totalorder %s1124_s17, %s862_s7 }
  0x57   : > { %p859_p2 = pnand %p857_p12, %p843_p0  ;;  %p865_p13 = scmp.lt.s32.totalorder %s863_s30, %s856_s8 }
  0x59   : > { %p860_p7 = pneg %p859_p2  ;;  %p866_p6 = por %p865_p13, %p864_p4 }
  0x5b   : > { %p867_p10 = pnand %p866_p6, %p860_p7 }
  0x5d   : > { %870 = shalt.err (!%p867_p10)
}
  0x5e   : > { %713 = dma.hbm_to_vmem [thread:$0]  (!%p1126_p11), %s1122_s16, 64, %s1124_s17, %s234_s19  }
  0x5f   : > { %253 = sbr.rel (%p1029_p8) target bundleno = 574 (0x23e), region = 44  ;;  %s1158_s20 = sand.u32 (!%p1029_p8), 1, %s933_s22  }
  0x60   : > { %s634_s9 = sshll.u32 (!%p1029_p8), %s1158_s20, 2  ;;  %s256_s13 = scalar_lea.sflag (!%p1029_p8), [#allocation3], %s1158_s20 }
  0x61   : > { %s1162_s10 = scalar_lea.vmem (!%p1029_p8), [#allocation2], %s634_s9  ;;  %p1248_p4 = scmp.ne.s32.totalorder (!%p1029_p8), %s1241_s27, 0 }
  0x66   : > { %916 = dma.done.wait (%p1248_p4), %s256_s13, 64  }
  0x67   : > { %918 = vsyncadd (%p1248_p4), %s256_s13, 4294967232  ;;  %p1249_p7 = scmp.eq.s32.totalorder %s1010_s25, 0 }
  0x69   : > { %920 = dma.done.wait (%p1249_p7), [#allocation6], 2048   ;;  %p1250_p8 = pmov %p1249_p7 }
  0x6a   : > { %v950_v0 = vmov 0   ;;  %v951_v1 = vmov 0.0   ;;  %v765_v2 = vld [vmem:[#allocation5 + $0x4] ss:$8 sps:$4 sm:$0xff]   ;;  %v767_v3 = vld [vmem:[#allocation5] ss:$8 sps:$4 sm:$0xff]  }
  0x6b   : > { %922 = vsyncadd (%p1250_p8), [#allocation6], 4294965248  ;;  %382 = vmatprep.mubr.bf16.mxu0 %v950_v0  ;;  %671 = vmatprep.subr.bf16.mxu1 %v951_v1  ;;  %v768_v4 = vld [vmem:[#allocation5 + $0x14] ss:$8 sps:$4 sm:$0xff]   ;;  %v770_v5 = vld [vmem:[#allocation5 + $0x10] ss:$8 sps:$4 sm:$0xff]  }
  0x6c   : > { %350 = vmatprep.subr.bf16.mxu0 %v765_v2  ;;  %v771_v6 = vld [vmem:[#allocation5 + $0x24] ss:$8 sps:$4 sm:$0xff]   ;;  %v773_v7 = vld [vmem:[#allocation5 + $0x20] ss:$8 sps:$4 sm:$0xff]   ;;  %v774_v9 = vld [vmem:[#allocation5 + $0x34] ss:$8 sps:$4 sm:$0xff]  }
  0x6d   : > { %351 = vmatpush1.bf16.msra.mxu0 %v767_v3  ;;  %v777_v8 = vld [vmem:[#allocation7] sm:$0xff]   ;;  %v778_v10 = vld [vmem:[#allocation7 + $0x8] sm:$0xff]   ;;  %v776_v11 = vld [vmem:[#allocation5 + $0x30] ss:$8 sps:$4 sm:$0xff]   ;;  %vm346_vm0 = vcmask 523264   ;;  %vm952_vm1 = vmmov 0  }
  0x6e   : > { %352 = vmatprep.subr.bf16.mxu0 %v768_v4  ;;  %672 = vmatpush3.bf16.msra.mxu1 %v777_v8  ;;  %v779_v12 = vld [vmem:[#allocation7 + $0x10] sm:$0xff]   ;;  %v297_v13 = vld [vmem:[%s1162_s10] sm:$0xf]  ;;  %v781_v15 = vld [vmem:[#allocation7 + $0x20] sm:$0xff]   ;;  %s637_s16 = sshll.u32 %s1158_s20, 3  ;;  %s659_s8 = sshll.u32 %s1010_s25, 7 }
  0x6f   : > { %673 = vmatprep.subr.bf16.mxu1 %v951_v1  ;;  %v780_v14 = vld [vmem:[#allocation7 + $0x18] sm:$0xff]   ;;  %v782_v16 = vld [vmem:[#allocation7 + $0x28] sm:$0xff]   ;;  %v783_v17 = vld [vmem:[#allocation7 + $0x30] sm:$0xff]   ;;  %687 = vmatprep.mubr.msk.bf16.mxu1 %vm952_vm1, %v951_v1  ;;  %s295_s15 = scalar_lea.vmem [#allocation8], %s637_s16  ;;  %s1187_s13 = scalar_lea.hbm %s1237_s6, %s659_s8 }
  0x70   : > { %v784_v18 = vld [vmem:[#allocation7 + $0x38] sm:$0xff]   ;;  %s537_s7 = sshll.u32 %s295_s15, 4  ;;  %s524_s10 = scalar_lea.sflag [#allocation4], %s1158_s20  ;;  %s1189_s7 = int_to_ptr.vmem [resolvable:$true] %s537_s7 }
  0x71   : > { %353 = vmatpush1.bf16.msra.mxu0 %v770_v5  ;;  %v647_v19 = vld [vmem:[%s1233_s2] ss:$0 sm:$0xff]  ;;  %s871_s27 = scalar_lea.vmem %s1189_s7, 128  ;;  %p1251_p0 = scmp.ne.s32.totalorder %s1246_s12, 0 }
  0x72   : > { %354 = vmatprep.subr.bf16.mxu0 %v771_v6  ;;  %674 = vmatpush3.bf16.msra.mxu1 %v778_v10  ;;  %v648_v27 = vld [vmem:[%s1234_s3] ss:$0 sm:$0xff]  ;;  %p872_p11 = scmp.ne.s32.totalorder %s1189_s7, %s871_s27  ;;  %s953_s25 = smov [#allocation8]  }
  0x73   : > { %675 = vmatprep.subr.bf16.mxu1 %v951_v1  ;;  %v649_v28 = vld [vmem:[%s1236_s5] ss:$0 sm:$0xff]  ;;  %s875_s29 = sshll.u32 %s953_s25, 4  ;;  %s876_s29 = int_to_ptr.vmem [resolvable:$false] %s875_s29 }
  0x74   : > { %p873_p1 = pnand %p872_p11, %p1251_p0  ;;  %s877_s16 = scalar_lea.vmem %s876_s29, 256 }
  0x75   : > { %355 = vmatpush1.bf16.msra.mxu0 %v773_v7  ;;  %p878_p5 = scmp.lt.s32.totalorder %s1189_s7, %s876_s29  ;;  %p879_p9 = scmp.lt.s32.totalorder %s877_s16, %s871_s27 }
  0x76   : > { %356 = vmatprep.subr.bf16.mxu0 %v774_v9  ;;  %676 = vmatpush3.bf16.msra.mxu1 %v779_v12  ;;  %p874_p3 = pneg %p873_p1 }
  0x77   : > { %677 = vmatprep.subr.bf16.mxu1 %v951_v1  ;;  %p880_p12 = por %p879_p9, %p878_p5 }
  0x79   : > { %357 = vmatpush1.bf16.msra.mxu0 %v776_v11  ;;  %p881_p2 = pnand %p880_p12, %p874_p3 }
  0x7a   : > { %678 = vmatpush3.bf16.msra.mxu1 %v780_v14 }
  0x7b   : > { %679 = vmatprep.subr.bf16.mxu1 %v951_v1 }
  0x7c   : > { %646 = vmatmul.mubr.msk.bf16.vlgmr.msra.gmra.mrb[0].mxu0 %vm346_vm0, %v297_v13 }
  0x7e   : > { %680 = vmatpush3.bf16.msra.mxu1 %v781_v15 }
  0x7f   : > { %681 = vmatprep.subr.bf16.mxu1 %v951_v1 }
  0x82   : > { %682 = vmatpush3.bf16.msra.mxu1 %v782_v16 }
  0x83   : > { %683 = vmatprep.subr.bf16.mxu1 %v951_v1 }
  0x86   : > { %684 = vmatpush3.bf16.msra.mxu1 %v783_v17 }
  0x87   : > { %685 = vmatprep.subr.bf16.mxu1 %v951_v1 }
  0x8a   : > { %686 = vmatpush3.bf16.msra.mxu1 %v784_v18 }
 0x14f   : > { %v384_v20 = vpop.f32.mrb[0].mxu0 }
 0x150   : > { %v398_v21 = vadd.f32 %v647_v19, %v384_v20  ;;  %v386_v22 = vpop.f32.mrb[1].mxu0 }
 0x151   : > { %v388_v23 = vpop.f32.mrb[2].mxu0  ;;  %v407_v30 = vadd.f32 %v648_v27, %v386_v22 }
 0x152   : > { %v399_v24 = vmax.f32 %v398_v21, 0.0  ;;  %v389_v25 = vpop.f32.mrb[3].mxu0 }
 0x154   : > { %v408_v26 = vpack.c.bf16 %v399_v24, %v399_v24 }
 0x156   : > { %688 = vmatmul.mubr.bf16.vlgmr.msra.gmra.mrb[0].mxu1 %v408_v26 }
 0x229   : > { %v514_v29 = vpop.f32.mrb[0].mxu1 }
 0x22a   : > { %v515_v31 = vadd.f32 %v649_v28, %v514_v29  ;;  %v689_v32 = vpop.f32.mrb[1].mxu1 }
 0x22b   : > { %v517_v33 = vpop.f32.mrb[2].mxu1 }
 0x22c   : > { %v520_v34 = vadd.f32 %v515_v31, %v407_v30  ;;  %v690_v35 = vpop.f32.mrb[3].mxu1 }
 0x22e   : > { %v521_v36 = vmax.f32 %v520_v34, 0.0 }
 0x230   : > { %522 = vst [vmem:[%s295_s15] sm:$0xff] %v521_v36 }
 0x231   : > { %884 = shalt.err (!%p881_p2)
}
 0x232   : > { %s885_s20 = scalar_lea.hbm %s1187_s13, 128  ;;  %s889_s19 = scalar_lea.hbm %s1237_s6, 256 }
 0x233   : > { %p886_p13 = scmp.ne.s32.totalorder %s1187_s13, %s885_s20  ;;  %p890_p4 = scmp.lt.u32.totalorder %s1187_s13, %s1237_s6 }
 0x234   : > { %p891_p7 = scmp.lt.u32.totalorder %s889_s19, %s885_s20  ;;  %p893_p11 = scmp.lt.u32.totalorder %s885_s20, %s1187_s13 }
 0x235   : > { %p887_p6 = pnand %p886_p13, %p1251_p0 }
 0x236   : > { %p892_p8 = por %p891_p7, %p890_p4 }
 0x237   : > { %p888_p10 = pneg %p887_p6 }
 0x238   : > { %p894_p1 = por %p893_p11, %p892_p8 }
 0x23a   : > { %p895_p3 = pnand %p894_p1, %p888_p10 }
 0x23c   : > { %898 = shalt.err (!%p895_p3)
}
 0x23d   : > { %701 = dma.vmem_to_hbm [thread:$0]  (%p1251_p0), %s1189_s7, 128, %s1187_s13, %s524_s10  }
 0x23e PF: > { %s549_s15 = sand.u32 1, %s929_s21   ;;  %p1252_p5 = scmp.ne.s32.totalorder %s1242_s28, 0 }
 0x23f   : > { %p1253_p9 = scmp.ge.s32.totalorder %s941_s24, 2  ;;  %s550_s30 = scalar_lea.sflag [#allocation4], %s549_s15 }
 0x241   : > { %p715_p12 = pnand %p1253_p9, %p1252_p5 }
 0x243   : > { %924 = dma.done.wait (!%p715_p12), %s550_s30, 128  }
 0x244   : > { %926 = vsyncadd (!%p715_p12), %s550_s30, 4294967168  ;;  %p20_p2 = scmp.ge.s32.totalorder %s1099_s26, 4   ;;  %s1254_s21 = smov %s933_s22 }
 0x245   : > { %s1255_s22 = smov %s937_s23  ;;  %s1256_s23 = smov %s1108_s11 }
 0x246   : > { %s1257_s24 = smov %s1099_s26  ;;  %22 = sbr.rel (!%p20_p2) target bundleno = 6 (0x6), region = 97 }
 0x24d   :  { %555 = vsyncpa [#allocation3], 1 }
 0x24e   :  { %557 = vsyncpa [#allocation3 + $0x1], 1 }
 0x24f   :  { %558 = vsyncpa [#allocation6], 1 }
 0x250   :  { %559 = vsyncpa [#allocation4], 1 }
 0x251   :  { %561 = vsyncpa [#allocation4 + $0x1], 1 }

</bundles_post_ra>
